<compile_context>
chip_gen: v7x
topology: tpu7x:2x2x1
jax: 0.10.0
libtpu: 0.0.40
codegen_flags: <defaults>
</compile_context>

<pallas_src>
import functools

import jax
import jax.numpy as jnp
from jax.experimental import pallas as pl
from jax.experimental.pallas import tpu as pltpu


# ----------------------------------------------------------------------------
# Pallas kernel
# ----------------------------------------------------------------------------
def make_wavenet_kernel(channels: int, aux_ch: int, kernels: int,
                        dilations, T: int, mxu_dtype):
    """Builds the WaveNet kernel (static config closed over)."""
    C, K, A = channels, kernels, aux_ch
    nblocks = len(dilations)
    inv_sqrt2 = 2.0 ** (-0.5)
    pad_of = lambda d: (K - 1) * d // 2

    def kernel(noise_ref, aux_ref,
               blockW_ref, auxW_ref, blockB_ref, rsW_ref,
               out1W_ref, head_ref, tail_ref,
               out_ref):
        noise = noise_ref[...]                     # (1, BT)
        a = aux_ref[...]                           # (A, BT)
        BT = noise.shape[-1]

        # proj_signal: Conv1d(1, C, 1) as a VPU broadcast (outer product),
        # no length-1 MXU contraction.
        head = head_ref[...]                       # (2C, 1)
        sigW, sigB = head[:C], head[C:]
        x = sigW * noise + sigB                    # (C, BT) f32

        # Aux projection hoisted: one matmul with M = nb*2C feeds all blocks.
        # (At production nb*2C*BT*4B may exceed a comfortable VMEM budget on
        # v7x; fall back to per-block aux matmuls in that case.)
        a_m = a.astype(mxu_dtype)
        hoist_aux = nblocks * 2 * C * BT * 4 <= (8 << 20)
        if hoist_aux:
            aux_proj = jnp.dot(auxW_ref[...], a_m,
                               preferred_element_type=jnp.float32)  # (nb*2C, BT)

        # Local time index within each batch element (batch is folded into
        # lanes).  Masks are 1-row and broadcast across channels.
        iota = jax.lax.broadcasted_iota(jnp.int32, (1, BT), 1)
        if (T & (T - 1)) == 0:
            local_t = iota & (T - 1)
        else:
            local_t = iota % T

        # Hoist the boundary masks (one per unique nonzero tap offset).
        offsets = sorted({k * d - pad_of(d)
                          for d in dilations for k in range(K)} - {0})
        masks = {o: (local_t + o >= 0) & (local_t + o < T) for o in offsets}

        def shifted(v, off):
            # shifted[:, g] = v[:, g + off] if the source lies in the same
            # batch element and inside [0, T), else 0.
            if off == 0:
                return v
            rolled = pltpu.roll(v, shift=(-off) % BT, axis=1)   # XLU rotate
            return jnp.where(masks[off], rolled, 0.0)

        # Toy sizes: concat K shifted copies + one fused dot (best MXU
        # utilization with tiny M).  Production: K accumulating dots so no
        # (K*C, BT) temporary is materialized.
        use_concat = K * C * BT * 4 <= (1 << 20)

        skips = jnp.zeros((C, BT), jnp.float32)

        # WaveNet blocks (nblocks is small -> unrolled; switch to
        # lax.fori_loop with dynamic weight indexing if nblocks grows).
        for i, d in enumerate(dilations):
            offs = [k * d - pad_of(d) for k in range(K)]
            bb = blockB_ref[i]                                  # (3C, 1)
            convB, resB = bb[:2 * C], bb[2 * C:]

            if hoist_aux:
                acc = aux_proj[i * 2 * C:(i + 1) * 2 * C] + convB
            else:
                acc = jnp.dot(auxW_ref[pl.ds(i * 2 * C, 2 * C), :], a_m,
                              preferred_element_type=jnp.float32) + convB

            Wi = blockW_ref[i]                                  # (2C, K*C)
            if use_concat:
                rhs = jnp.concatenate([shifted(x, o) for o in offs],
                                      axis=0).astype(mxu_dtype)
                acc = acc + jnp.dot(Wi, rhs,
                                    preferred_element_type=jnp.float32)
            else:
                for k, o in enumerate(offs):
                    acc = acc + jnp.dot(Wi[:, k * C:(k + 1) * C],
                                        shifted(x, o).astype(mxu_dtype),
                                        preferred_element_type=jnp.float32)

            gate, context = acc[:C], acc[C:]
            # sigmoid(g) == 0.5*tanh(0.5*g) + 0.5 -> single EUP op.
            h = (0.5 * jnp.tanh(0.5 * gate) + 0.5) * jnp.tanh(context)
            h_m = h.astype(mxu_dtype)

            if i == nblocks - 1:
                # The residual path is dead after the last block: compute
                # only the skip half of the fused res/skip matmul.
                skips = skips + jnp.dot(rsW_ref[i][C:], h_m,
                                        preferred_element_type=jnp.float32)
            else:
                # Fused proj_res + proj_skip: one (2C, C) matmul.
                rs = jnp.dot(rsW_ref[i], h_m,
                             preferred_element_type=jnp.float32)
                x = (h + rs[:C] + resB) * inv_sqrt2
                skips = skips + rs[C:]

        # proj_out: ReLU -> Conv1d(C,C,1) -> ReLU -> Conv1d(C,1,1) -> Tanh.
        # skipB was summed over blocks at pack time; skip_scale is folded
        # into out1W (relu(a*x) = a*relu(x) for a > 0).
        tail = tail_ref[...]                       # (3C+1, 1)
        skipB_sum = tail[:C]
        out1B = tail[C:2 * C]
        out2Wc = tail[2 * C:3 * C]
        out2B = tail[3 * C:]

        s = jnp.maximum(skips + skipB_sum, 0.0)
        s = jnp.dot(out1W_ref[...], s.astype(mxu_dtype),
                    preferred_element_type=jnp.float32) + out1B
        s = jnp.maximum(s, 0.0)
        # Final Conv1d(C, 1, 1) as VPU multiply + XLU sublane reduce
        # (1-row MXU output would waste the whole push).
        o = jnp.sum(out2Wc * s, axis=0, keepdims=True) + out2B
        out_ref[...] = jnp.tanh(o)                 # (1, BT)

    return kernel


# ----------------------------------------------------------------------------
# Wrapper: parameter packing + pallas_call
# ----------------------------------------------------------------------------
def _pack_params(p, *, channels, kernels, mxu_dtype):
    C, K = channels, kernels
    convW = p["convW"]                                          # (nb, 2C, C, K)
    nb = convW.shape[0]
    skip_scale = float(nb) ** (-0.5)
    # K must NOT sit on the lane axis: (nb, 2C, C, K) -> (nb, 2C, K*C) with
    # column index k*C + c_in matching the stacked-taps row order.
    blockW = jnp.transpose(convW, (0, 1, 3, 2)).reshape(
        nb, 2 * C, K * C).astype(mxu_dtype)                     # (nb, 2C, K*C)
    auxW = p["auxW"].reshape(nb * 2 * C, -1).astype(mxu_dtype)  # (nb*2C, A)
    blockB = jnp.concatenate([p["convB"], p["resB"]], axis=1)   # (nb, 3C, 1)
    rsW = jnp.concatenate([p["resW"], p["skipW"]],
                          axis=1).astype(mxu_dtype)             # (nb, 2C, C)
    out1W = (p["out1W"] * skip_scale).astype(mxu_dtype)         # scale folded
    head = jnp.concatenate([p["sigW"], p["sigB"]], axis=0)      # (2C, 1)
    skipB_sum = jnp.sum(p["skipB"], axis=0)                     # (C, 1)
    tail = jnp.concatenate([skipB_sum, p["out1B"], p["out2W"].T,
                            p["out2B"]], axis=0)                # (3C+1, 1)
    return (blockW, auxW, blockB, rsW, out1W, head, tail)


def _pick_batch_block(B, T, target_lanes=2048):
    """Batch elems per grid step.

    Guarantee >= 2 grid steps whenever B >= 2 so both v7x TensorCores get
    work (the extra ~0.35 us/step is negligible on single-TC v5e/v6e), then
    aim for >= target_lanes lanes per step, and make it divide B.
    """
    if T % 128 != 0:
        return B                      # keep the full lane extent per block
    cap = max(1, B // 2) if B >= 2 else B
    bb = max(1, min(cap, max(1, target_lanes // T)))
    while B % bb:
        bb -= 1
    return bb


def wavenet_pallas(noise, aux, params, *, channels, kernels, dilations,
                   batch_block=None, mxu_dtype=None):
    """noise: [B, T] f32, aux: [B, A, T] f32  ->  [B, T] f32."""
    B, T = noise.shape
    A = aux.shape[1]

    if mxu_dtype is None:
        # bf16 MXU operands pay off once the contraction dims are large
        # (production C >= 64); keep exact f32 at toy sizes.
        mxu_dtype = jnp.bfloat16 if channels >= 64 else jnp.float32

    if batch_block is None:
        batch_block = _pick_batch_block(B, T)
    assert B % batch_block == 0
    BT = batch_block * T

    # Fold batch into the lane axis: full-lane-width matmuls, unmasked stores.
    noise2d = noise.reshape(1, B * T)                           # (1, B*T)
    aux2d = jnp.transpose(aux, (1, 0, 2)).reshape(A, B * T)     # (A, B*T)

    weights = _pack_params(params, channels=channels, kernels=kernels,
                           mxu_dtype=mxu_dtype)
    kernel = make_wavenet_kernel(channels, A, kernels, tuple(dilations), T,
                                 mxu_dtype)

    def full_spec(w):
        nd = w.ndim
        return pl.BlockSpec(w.shape, lambda i, _nd=nd: (0,) * _nd)

    in_specs = [
        pl.BlockSpec((1, BT), lambda i: (0, i)),   # noise, lane-chunked
        pl.BlockSpec((A, BT), lambda i: (0, i)),   # aux,   lane-chunked
    ] + [full_spec(w) for w in weights]

    out = pl.pallas_call(
        kernel,
        out_shape=jax.ShapeDtypeStruct((1, B * T), jnp.float32),
        grid_spec=pltpu.PrefetchScalarGridSpec(
            num_scalar_prefetch=0,
            grid=(B // batch_block,),
            in_specs=in_specs,
            out_specs=pl.BlockSpec((1, BT), lambda i: (0, i)),
        ),
        compiler_params=pltpu.CompilerParams(
            dimension_semantics=("parallel",)),
    )(noise2d, aux2d, *weights)
    return out.reshape(B, T)


# ----------------------------------------------------------------------------
# Pure-JAX reference (same math, batched) for a sanity check
# ----------------------------------------------------------------------------
def wavenet_ref(noise, aux, p, *, channels, kernels, dilations):
    C, K = channels, kernels
    B, T = noise.shape
    nb = len(dilations)
    x = jnp.matmul(p["sigW"], noise[:, None, :]) + p["sigB"]
    skips = jnp.zeros((B, C, T), jnp.float32)
    for i, d in enumerate(dilations):
        pad = (K - 1) * d // 2
        xp = jnp.pad(x, ((0, 0), (0, 0), (pad, pad)))
        acc = jnp.matmul(p["auxW"][i], aux) + p["convB"][i]
        for k in range(K):
            acc = acc + jnp.matmul(p["convW"][i][:, :, k],
                                   xp[..., k * d:k * d + T])
        gate, ctx = acc[:, :C], acc[:, C:]
        h = jax.nn.sigmoid(gate) * jnp.tanh(ctx)
        x = (h + jnp.matmul(p["resW"][i], h) + p["resB"][i]) * 2.0 ** (-0.5)
        skips = skips + jnp.matmul(p["skipW"][i], h) + p["skipB"][i]
    s = skips * float(nb) ** (-0.5)
    s = jnp.maximum(s, 0.0)
    s = jnp.matmul(p["out1W"], s) + p["out1B"]
    s = jnp.maximum(s, 0.0)
    s = jnp.matmul(p["out2W"], s) + p["out2B"]
    return jnp.tanh(s)[:, 0, :]


# ----------------------------------------------------------------------------
# Deterministic synthetic parameters
# ----------------------------------------------------------------------------
def init_params(key, *, channels, aux, kernels, nblocks):
    C, A, K = channels, aux, kernels
    ks = jax.random.split(key, 13)
    n = jax.random.normal
    return {
        "sigW":  0.3 * n(ks[0], (C, 1), jnp.float32),
        "sigB":  0.1 * n(ks[1], (C, 1), jnp.float32),
        "convW": 0.3 * n(ks[2], (nblocks, 2 * C, C, K), jnp.float32),
        "convB": 0.1 * n(ks[3], (nblocks, 2 * C, 1), jnp.float32),
        "auxW":  0.3 * n(ks[4], (nblocks, 2 * C, A), jnp.float32),
        "resW":  0.3 * n(ks[5], (nblocks, C, C), jnp.float32),
        "resB":  0.1 * n(ks[6], (nblocks, C, 1), jnp.float32),
        "skipW": 0.3 * n(ks[7], (nblocks, C, C), jnp.float32),
        "skipB": 0.1 * n(ks[8], (nblocks, C, 1), jnp.float32),
        "out1W": 0.3 * n(ks[9], (C, C), jnp.float32),
        "out1B": 0.1 * n(ks[10], (C, 1), jnp.float32),
        "out2W": 0.3 * n(ks[11], (1, C), jnp.float32),
        "out2B": 0.1 * n(ks[12], (1, 1), jnp.float32),
    }


if __name__ == "__main__":
    # Module config: WaveNet(channels=8, aux=4, kernels=3, dilation_rate=2,
    #                        layers=2, cycles=2)  -> 4 blocks, dilations 1,2,1,2
    channels, aux_ch, kernels = 8, 4, 3
    dilation_rate, layers, cycles = 2, 2, 2
    dilations = [dilation_rate ** j for _ in range(cycles) for j in range(layers)]

    B, T = 2, 128

    key = jax.random.PRNGKey(0)
    k_noise, k_aux, k_param = jax.random.split(key, 3)
    noise = jax.random.normal(k_noise, (B, T), jnp.float32)
    aux = jax.random.normal(k_aux, (B, aux_ch, T), jnp.float32)
    params = init_params(k_param, channels=channels, aux=aux_ch,
                         kernels=kernels, nblocks=len(dilations))

    fwd = jax.jit(functools.partial(
        wavenet_pallas, channels=channels, kernels=kernels,
        dilations=tuple(dilations)))
    out = fwd(noise, aux, params)
    out = jax.block_until_ready(out)

    ref = wavenet_ref(noise, aux, params, channels=channels,
                      kernels=kernels, dilations=dilations)
    assert out.shape == (B, T)
    assert jnp.max(jnp.abs(out - ref)) < 5e-3, "mismatch vs. pure-JAX reference"

    print("KERNEL_OK")
</pallas_src>

<mosaic_0001>
module attributes {stable_mosaic.version = 11 : i64} {
  func.func @kernel(%arg0: i32, %arg1: memref<1x128xf32, #tpu.memory_space<vmem>>, %arg2: memref<4x128xf32, #tpu.memory_space<vmem>>, %arg3: memref<4x16x24xf32, #tpu.memory_space<vmem>>, %arg4: memref<64x4xf32, #tpu.memory_space<vmem>>, %arg5: memref<4x24x1xf32, #tpu.memory_space<vmem>>, %arg6: memref<4x16x8xf32, #tpu.memory_space<vmem>>, %arg7: memref<8x8xf32, #tpu.memory_space<vmem>>, %arg8: memref<16x1xf32, #tpu.memory_space<vmem>>, %arg9: memref<25x1xf32, #tpu.memory_space<vmem>>, %arg10: memref<1x128xf32, #tpu.memory_space<vmem>>) attributes {dimension_semantics = [#tpu.dimension_semantics<parallel>], iteration_bounds = array<i64: 2>, scalar_prefetch = 0 : i64, scratch_operands = 0 : i64, tpu.core_type = #tpu.core_type<tc>, window_params = [{transform_indices = @transform_0, window_bounds = array<i64: 1, 128>}, {transform_indices = @transform_1, window_bounds = array<i64: 4, 128>}, {pipeline_mode = #tpu.pipeline_mode<synchronous>, transform_indices = @transform_2, window_bounds = array<i64: 4, 16, 24>}, {pipeline_mode = #tpu.pipeline_mode<synchronous>, transform_indices = @transform_3, window_bounds = array<i64: 64, 4>}, {pipeline_mode = #tpu.pipeline_mode<synchronous>, transform_indices = @transform_4, window_bounds = array<i64: 4, 24, 1>}, {pipeline_mode = #tpu.pipeline_mode<synchronous>, transform_indices = @transform_5, window_bounds = array<i64: 4, 16, 8>}, {pipeline_mode = #tpu.pipeline_mode<synchronous>, transform_indices = @transform_6, window_bounds = array<i64: 8, 8>}, {pipeline_mode = #tpu.pipeline_mode<synchronous>, transform_indices = @transform_7, window_bounds = array<i64: 16, 1>}, {pipeline_mode = #tpu.pipeline_mode<synchronous>, transform_indices = @transform_8, window_bounds = array<i64: 25, 1>}, {transform_indices = @transform_9, window_bounds = array<i64: 1, 128>}]} {
    %c0 = arith.constant 0 : index
    %c0_0 = arith.constant 0 : index
    %0 = vector.load %arg1[%c0, %c0_0] : memref<1x128xf32, #tpu.memory_space<vmem>>, vector<1x128xf32>
    %c0_1 = arith.constant 0 : index
    %c0_2 = arith.constant 0 : index
    %1 = vector.load %arg2[%c0_1, %c0_2] : memref<4x128xf32, #tpu.memory_space<vmem>>, vector<4x128xf32>
    %c0_3 = arith.constant 0 : index
    %c0_4 = arith.constant 0 : index
    %2 = vector.load %arg8[%c0_3, %c0_4] : memref<16x1xf32, #tpu.memory_space<vmem>>, vector<16x1xf32>
    %3 = vector.extract_strided_slice %2 {offsets = [0, 0], sizes = [8, 1], strides = [1, 1]} : vector<16x1xf32> to vector<8x1xf32>
    %4 = vector.extract_strided_slice %2 {offsets = [8, 0], sizes = [8, 1], strides = [1, 1]} : vector<16x1xf32> to vector<8x1xf32>
    %5 = vector.broadcast %3 : vector<8x1xf32> to vector<8x128xf32>
    %6 = vector.broadcast %0 : vector<1x128xf32> to vector<8x128xf32>
    %7 = arith.mulf %5, %6 : vector<8x128xf32>
    %8 = vector.broadcast %4 : vector<8x1xf32> to vector<8x128xf32>
    %9 = arith.addf %7, %8 : vector<8x128xf32>
    %c0_5 = arith.constant 0 : index
    %c0_6 = arith.constant 0 : index
    %10 = vector.load %arg4[%c0_5, %c0_6] : memref<64x4xf32, #tpu.memory_space<vmem>>, vector<64x4xf32>
    %cst = arith.constant dense<0.000000e+00> : vector<64x128xf32>
    %11 = tpu.matmul %10, %1, %cst {dimension_numbers = #tpu.dot_dimension_numbers<[1], [0], [0], [1], [0, 0, 1, 1], [], []>} : vector<64x4xf32>, vector<4x128xf32>, vector<64x128xf32> -> vector<64x128xf32>
    %12 = tpu.iota {dimensions = array<i32: 1>} : vector<1x128xi32>
    %c127_i32 = arith.constant 127 : i32
    %13 = vector.broadcast %c127_i32 : i32 to vector<1x128xi32>
    %14 = arith.andi %12, %13 : vector<1x128xi32>
    %c-2_i32 = arith.constant -2 : i32
    %15 = vector.broadcast %c-2_i32 : i32 to vector<1x128xi32>
    %16 = arith.addi %14, %15 : vector<1x128xi32>
    %c0_i32 = arith.constant 0 : i32
    %17 = vector.broadcast %c0_i32 : i32 to vector<1x128xi32>
    %18 = arith.cmpi sge, %16, %17 : vector<1x128xi32>
    %c-2_i32_7 = arith.constant -2 : i32
    %19 = vector.broadcast %c-2_i32_7 : i32 to vector<1x128xi32>
    %20 = arith.addi %14, %19 : vector<1x128xi32>
    %c128_i32 = arith.constant 128 : i32
    %21 = vector.broadcast %c128_i32 : i32 to vector<1x128xi32>
    %22 = arith.cmpi slt, %20, %21 : vector<1x128xi32>
    %23 = arith.andi %18, %22 : vector<1x128xi1>
    %c-1_i32 = arith.constant -1 : i32
    %24 = vector.broadcast %c-1_i32 : i32 to vector<1x128xi32>
    %25 = arith.addi %14, %24 : vector<1x128xi32>
    %c0_i32_8 = arith.constant 0 : i32
    %26 = vector.broadcast %c0_i32_8 : i32 to vector<1x128xi32>
    %27 = arith.cmpi sge, %25, %26 : vector<1x128xi32>
    %c-1_i32_9 = arith.constant -1 : i32
    %28 = vector.broadcast %c-1_i32_9 : i32 to vector<1x128xi32>
    %29 = arith.addi %14, %28 : vector<1x128xi32>
    %c128_i32_10 = arith.constant 128 : i32
    %30 = vector.broadcast %c128_i32_10 : i32 to vector<1x128xi32>
    %31 = arith.cmpi slt, %29, %30 : vector<1x128xi32>
    %32 = arith.andi %27, %31 : vector<1x128xi1>
    %c1_i32 = arith.constant 1 : i32
    %33 = vector.broadcast %c1_i32 : i32 to vector<1x128xi32>
    %34 = arith.addi %14, %33 : vector<1x128xi32>
    %c0_i32_11 = arith.constant 0 : i32
    %35 = vector.broadcast %c0_i32_11 : i32 to vector<1x128xi32>
    %36 = arith.cmpi sge, %34, %35 : vector<1x128xi32>
    %c1_i32_12 = arith.constant 1 : i32
    %37 = vector.broadcast %c1_i32_12 : i32 to vector<1x128xi32>
    %38 = arith.addi %14, %37 : vector<1x128xi32>
    %c128_i32_13 = arith.constant 128 : i32
    %39 = vector.broadcast %c128_i32_13 : i32 to vector<1x128xi32>
    %40 = arith.cmpi slt, %38, %39 : vector<1x128xi32>
    %41 = arith.andi %36, %40 : vector<1x128xi1>
    %c2_i32 = arith.constant 2 : i32
    %42 = vector.broadcast %c2_i32 : i32 to vector<1x128xi32>
    %43 = arith.addi %14, %42 : vector<1x128xi32>
    %c0_i32_14 = arith.constant 0 : i32
    %44 = vector.broadcast %c0_i32_14 : i32 to vector<1x128xi32>
    %45 = arith.cmpi sge, %43, %44 : vector<1x128xi32>
    %c2_i32_15 = arith.constant 2 : i32
    %46 = vector.broadcast %c2_i32_15 : i32 to vector<1x128xi32>
    %47 = arith.addi %14, %46 : vector<1x128xi32>
    %c128_i32_16 = arith.constant 128 : i32
    %48 = vector.broadcast %c128_i32_16 : i32 to vector<1x128xi32>
    %49 = arith.cmpi slt, %47, %48 : vector<1x128xi32>
    %50 = arith.andi %45, %49 : vector<1x128xi1>
    %cst_17 = arith.constant 0.000000e+00 : f32
    %51 = vector.broadcast %cst_17 : f32 to vector<8x128xf32>
    %c0_18 = arith.constant 0 : index
    %c0_19 = arith.constant 0 : index
    %c0_20 = arith.constant 0 : index
    %52 = vector.load %arg5[%c0_18, %c0_19, %c0_20] : memref<4x24x1xf32, #tpu.memory_space<vmem>>, vector<1x24x1xf32>
    %53 = vector.shape_cast %52 : vector<1x24x1xf32> to vector<24x1xf32>
    %54 = vector.extract_strided_slice %53 {offsets = [0, 0], sizes = [16, 1], strides = [1, 1]} : vector<24x1xf32> to vector<16x1xf32>
    %55 = vector.extract_strided_slice %53 {offsets = [16, 0], sizes = [8, 1], strides = [1, 1]} : vector<24x1xf32> to vector<8x1xf32>
    %56 = vector.extract_strided_slice %11 {offsets = [0, 0], sizes = [16, 128], strides = [1, 1]} : vector<64x128xf32> to vector<16x128xf32>
    %57 = vector.broadcast %54 : vector<16x1xf32> to vector<16x128xf32>
    %58 = arith.addf %56, %57 : vector<16x128xf32>
    %c0_21 = arith.constant 0 : index
    %c0_22 = arith.constant 0 : index
    %c0_23 = arith.constant 0 : index
    %59 = vector.load %arg3[%c0_21, %c0_22, %c0_23] : memref<4x16x24xf32, #tpu.memory_space<vmem>>, vector<1x16x24xf32>
    %60 = vector.shape_cast %59 : vector<1x16x24xf32> to vector<16x24xf32>
    %c1_i32_24 = arith.constant 1 : i32
    %61 = tpu.dynamic_rotate %9 by %c1_i32_24 dim 1 : vector<8x128xf32>, i32 -> vector<8x128xf32>
    %cst_25 = arith.constant 0.000000e+00 : f32
    %62 = vector.shape_cast %32 : vector<1x128xi1> to vector<1x128xi1>
    %63 = vector.broadcast %62 : vector<1x128xi1> to vector<8x128xi1>
    %64 = vector.broadcast %cst_25 : f32 to vector<8x128xf32>
    %65 = arith.select %63, %61, %64 : vector<8x128xi1>, vector<8x128xf32>
    %c127_i32_26 = arith.constant 127 : i32
    %66 = tpu.dynamic_rotate %9 by %c127_i32_26 dim 1 : vector<8x128xf32>, i32 -> vector<8x128xf32>
    %cst_27 = arith.constant 0.000000e+00 : f32
    %67 = vector.shape_cast %41 : vector<1x128xi1> to vector<1x128xi1>
    %68 = vector.broadcast %67 : vector<1x128xi1> to vector<8x128xi1>
    %69 = vector.broadcast %cst_27 : f32 to vector<8x128xf32>
    %70 = arith.select %68, %66, %69 : vector<8x128xi1>, vector<8x128xf32>
    %71 = tpu.concatenate %65, %9, %70 in 0 : vector<8x128xf32>, vector<8x128xf32>, vector<8x128xf32> -> vector<24x128xf32>
    %cst_28 = arith.constant dense<0.000000e+00> : vector<16x128xf32>
    %72 = tpu.matmul %60, %71, %cst_28 {dimension_numbers = #tpu.dot_dimension_numbers<[1], [0], [0], [1], [0, 0, 1, 1], [], []>} : vector<16x24xf32>, vector<24x128xf32>, vector<16x128xf32> -> vector<16x128xf32>
    %73 = arith.addf %58, %72 : vector<16x128xf32>
    %74 = vector.extract_strided_slice %73 {offsets = [0, 0], sizes = [8, 128], strides = [1, 1]} : vector<16x128xf32> to vector<8x128xf32>
    %75 = vector.extract_strided_slice %73 {offsets = [8, 0], sizes = [8, 128], strides = [1, 1]} : vector<16x128xf32> to vector<8x128xf32>
    %cst_29 = arith.constant 5.000000e-01 : f32
    %76 = vector.broadcast %cst_29 : f32 to vector<8x128xf32>
    %77 = arith.mulf %76, %74 : vector<8x128xf32>
    %78 = math.tanh %77 : vector<8x128xf32>
    %cst_30 = arith.constant 5.000000e-01 : f32
    %79 = vector.broadcast %cst_30 : f32 to vector<8x128xf32>
    %80 = arith.mulf %79, %78 : vector<8x128xf32>
    %cst_31 = arith.constant 5.000000e-01 : f32
    %81 = vector.broadcast %cst_31 : f32 to vector<8x128xf32>
    %82 = arith.addf %80, %81 : vector<8x128xf32>
    %83 = math.tanh %75 : vector<8x128xf32>
    %84 = arith.mulf %82, %83 : vector<8x128xf32>
    %c0_32 = arith.constant 0 : index
    %c0_33 = arith.constant 0 : index
    %c0_34 = arith.constant 0 : index
    %85 = vector.load %arg6[%c0_32, %c0_33, %c0_34] : memref<4x16x8xf32, #tpu.memory_space<vmem>>, vector<1x16x8xf32>
    %86 = vector.shape_cast %85 : vector<1x16x8xf32> to vector<16x8xf32>
    %cst_35 = arith.constant dense<0.000000e+00> : vector<16x128xf32>
    %87 = tpu.matmul %86, %84, %cst_35 {dimension_numbers = #tpu.dot_dimension_numbers<[1], [0], [0], [1], [0, 0, 1, 1], [], []>} : vector<16x8xf32>, vector<8x128xf32>, vector<16x128xf32> -> vector<16x128xf32>
    %88 = vector.extract_strided_slice %87 {offsets = [0, 0], sizes = [8, 128], strides = [1, 1]} : vector<16x128xf32> to vector<8x128xf32>
    %89 = arith.addf %84, %88 : vector<8x128xf32>
    %90 = vector.broadcast %55 : vector<8x1xf32> to vector<8x128xf32>
    %91 = arith.addf %89, %90 : vector<8x128xf32>
    %cst_36 = arith.constant 0.707106769 : f32
    %92 = vector.broadcast %cst_36 : f32 to vector<8x128xf32>
    %93 = arith.mulf %91, %92 : vector<8x128xf32>
    %94 = vector.extract_strided_slice %87 {offsets = [8, 0], sizes = [8, 128], strides = [1, 1]} : vector<16x128xf32> to vector<8x128xf32>
    %95 = arith.addf %51, %94 : vector<8x128xf32>
    %c1 = arith.constant 1 : index
    %c0_37 = arith.constant 0 : index
    %c0_38 = arith.constant 0 : index
    %96 = vector.load %arg5[%c1, %c0_37, %c0_38] : memref<4x24x1xf32, #tpu.memory_space<vmem>>, vector<1x24x1xf32>
    %97 = vector.shape_cast %96 : vector<1x24x1xf32> to vector<24x1xf32>
    %98 = vector.extract_strided_slice %97 {offsets = [0, 0], sizes = [16, 1], strides = [1, 1]} : vector<24x1xf32> to vector<16x1xf32>
    %99 = vector.extract_strided_slice %97 {offsets = [16, 0], sizes = [8, 1], strides = [1, 1]} : vector<24x1xf32> to vector<8x1xf32>
    %100 = vector.extract_strided_slice %11 {offsets = [16, 0], sizes = [16, 128], strides = [1, 1]} : vector<64x128xf32> to vector<16x128xf32>
    %101 = vector.broadcast %98 : vector<16x1xf32> to vector<16x128xf32>
    %102 = arith.addf %100, %101 : vector<16x128xf32>
    %c1_39 = arith.constant 1 : index
    %c0_40 = arith.constant 0 : index
    %c0_41 = arith.constant 0 : index
    %103 = vector.load %arg3[%c1_39, %c0_40, %c0_41] : memref<4x16x24xf32, #tpu.memory_space<vmem>>, vector<1x16x24xf32>
    %104 = vector.shape_cast %103 : vector<1x16x24xf32> to vector<16x24xf32>
    %c2_i32_42 = arith.constant 2 : i32
    %105 = tpu.dynamic_rotate %93 by %c2_i32_42 dim 1 : vector<8x128xf32>, i32 -> vector<8x128xf32>
    %cst_43 = arith.constant 0.000000e+00 : f32
    %106 = vector.shape_cast %23 : vector<1x128xi1> to vector<1x128xi1>
    %107 = vector.broadcast %106 : vector<1x128xi1> to vector<8x128xi1>
    %108 = vector.broadcast %cst_43 : f32 to vector<8x128xf32>
    %109 = arith.select %107, %105, %108 : vector<8x128xi1>, vector<8x128xf32>
    %c126_i32 = arith.constant 126 : i32
    %110 = tpu.dynamic_rotate %93 by %c126_i32 dim 1 : vector<8x128xf32>, i32 -> vector<8x128xf32>
    %cst_44 = arith.constant 0.000000e+00 : f32
    %111 = vector.shape_cast %50 : vector<1x128xi1> to vector<1x128xi1>
    %112 = vector.broadcast %111 : vector<1x128xi1> to vector<8x128xi1>
    %113 = vector.broadcast %cst_44 : f32 to vector<8x128xf32>
    %114 = arith.select %112, %110, %113 : vector<8x128xi1>, vector<8x128xf32>
    %115 = tpu.concatenate %109, %93, %114 in 0 : vector<8x128xf32>, vector<8x128xf32>, vector<8x128xf32> -> vector<24x128xf32>
    %cst_45 = arith.constant dense<0.000000e+00> : vector<16x128xf32>
    %116 = tpu.matmul %104, %115, %cst_45 {dimension_numbers = #tpu.dot_dimension_numbers<[1], [0], [0], [1], [0, 0, 1, 1], [], []>} : vector<16x24xf32>, vector<24x128xf32>, vector<16x128xf32> -> vector<16x128xf32>
    %117 = arith.addf %102, %116 : vector<16x128xf32>
    %118 = vector.extract_strided_slice %117 {offsets = [0, 0], sizes = [8, 128], strides = [1, 1]} : vector<16x128xf32> to vector<8x128xf32>
    %119 = vector.extract_strided_slice %117 {offsets = [8, 0], sizes = [8, 128], strides = [1, 1]} : vector<16x128xf32> to vector<8x128xf32>
    %cst_46 = arith.constant 5.000000e-01 : f32
    %120 = vector.broadcast %cst_46 : f32 to vector<8x128xf32>
    %121 = arith.mulf %120, %118 : vector<8x128xf32>
    %122 = math.tanh %121 : vector<8x128xf32>
    %cst_47 = arith.constant 5.000000e-01 : f32
    %123 = vector.broadcast %cst_47 : f32 to vector<8x128xf32>
    %124 = arith.mulf %123, %122 : vector<8x128xf32>
    %cst_48 = arith.constant 5.000000e-01 : f32
    %125 = vector.broadcast %cst_48 : f32 to vector<8x128xf32>
    %126 = arith.addf %124, %125 : vector<8x128xf32>
    %127 = math.tanh %119 : vector<8x128xf32>
    %128 = arith.mulf %126, %127 : vector<8x128xf32>
    %c1_49 = arith.constant 1 : index
    %c0_50 = arith.constant 0 : index
    %c0_51 = arith.constant 0 : index
    %129 = vector.load %arg6[%c1_49, %c0_50, %c0_51] : memref<4x16x8xf32, #tpu.memory_space<vmem>>, vector<1x16x8xf32>
    %130 = vector.shape_cast %129 : vector<1x16x8xf32> to vector<16x8xf32>
    %cst_52 = arith.constant dense<0.000000e+00> : vector<16x128xf32>
    %131 = tpu.matmul %130, %128, %cst_52 {dimension_numbers = #tpu.dot_dimension_numbers<[1], [0], [0], [1], [0, 0, 1, 1], [], []>} : vector<16x8xf32>, vector<8x128xf32>, vector<16x128xf32> -> vector<16x128xf32>
    %132 = vector.extract_strided_slice %131 {offsets = [0, 0], sizes = [8, 128], strides = [1, 1]} : vector<16x128xf32> to vector<8x128xf32>
    %133 = arith.addf %128, %132 : vector<8x128xf32>
    %134 = vector.broadcast %99 : vector<8x1xf32> to vector<8x128xf32>
    %135 = arith.addf %133, %134 : vector<8x128xf32>
    %cst_53 = arith.constant 0.707106769 : f32
    %136 = vector.broadcast %cst_53 : f32 to vector<8x128xf32>
    %137 = arith.mulf %135, %136 : vector<8x128xf32>
    %138 = vector.extract_strided_slice %131 {offsets = [8, 0], sizes = [8, 128], strides = [1, 1]} : vector<16x128xf32> to vector<8x128xf32>
    %139 = arith.addf %95, %138 : vector<8x128xf32>
    %c2 = arith.constant 2 : index
    %c0_54 = arith.constant 0 : index
    %c0_55 = arith.constant 0 : index
    %140 = vector.load %arg5[%c2, %c0_54, %c0_55] : memref<4x24x1xf32, #tpu.memory_space<vmem>>, vector<1x24x1xf32>
    %141 = vector.shape_cast %140 : vector<1x24x1xf32> to vector<24x1xf32>
    %142 = vector.extract_strided_slice %141 {offsets = [0, 0], sizes = [16, 1], strides = [1, 1]} : vector<24x1xf32> to vector<16x1xf32>
    %143 = vector.extract_strided_slice %141 {offsets = [16, 0], sizes = [8, 1], strides = [1, 1]} : vector<24x1xf32> to vector<8x1xf32>
    %144 = vector.extract_strided_slice %11 {offsets = [32, 0], sizes = [16, 128], strides = [1, 1]} : vector<64x128xf32> to vector<16x128xf32>
    %145 = vector.broadcast %142 : vector<16x1xf32> to vector<16x128xf32>
    %146 = arith.addf %144, %145 : vector<16x128xf32>
    %c2_56 = arith.constant 2 : index
    %c0_57 = arith.constant 0 : index
    %c0_58 = arith.constant 0 : index
    %147 = vector.load %arg3[%c2_56, %c0_57, %c0_58] : memref<4x16x24xf32, #tpu.memory_space<vmem>>, vector<1x16x24xf32>
    %148 = vector.shape_cast %147 : vector<1x16x24xf32> to vector<16x24xf32>
    %c1_i32_59 = arith.constant 1 : i32
    %149 = tpu.dynamic_rotate %137 by %c1_i32_59 dim 1 : vector<8x128xf32>, i32 -> vector<8x128xf32>
    %cst_60 = arith.constant 0.000000e+00 : f32
    %150 = vector.shape_cast %32 : vector<1x128xi1> to vector<1x128xi1>
    %151 = vector.broadcast %150 : vector<1x128xi1> to vector<8x128xi1>
    %152 = vector.broadcast %cst_60 : f32 to vector<8x128xf32>
    %153 = arith.select %151, %149, %152 : vector<8x128xi1>, vector<8x128xf32>
    %c127_i32_61 = arith.constant 127 : i32
    %154 = tpu.dynamic_rotate %137 by %c127_i32_61 dim 1 : vector<8x128xf32>, i32 -> vector<8x128xf32>
    %cst_62 = arith.constant 0.000000e+00 : f32
    %155 = vector.shape_cast %41 : vector<1x128xi1> to vector<1x128xi1>
    %156 = vector.broadcast %155 : vector<1x128xi1> to vector<8x128xi1>
    %157 = vector.broadcast %cst_62 : f32 to vector<8x128xf32>
    %158 = arith.select %156, %154, %157 : vector<8x128xi1>, vector<8x128xf32>
    %159 = tpu.concatenate %153, %137, %158 in 0 : vector<8x128xf32>, vector<8x128xf32>, vector<8x128xf32> -> vector<24x128xf32>
    %cst_63 = arith.constant dense<0.000000e+00> : vector<16x128xf32>
    %160 = tpu.matmul %148, %159, %cst_63 {dimension_numbers = #tpu.dot_dimension_numbers<[1], [0], [0], [1], [0, 0, 1, 1], [], []>} : vector<16x24xf32>, vector<24x128xf32>, vector<16x128xf32> -> vector<16x128xf32>
    %161 = arith.addf %146, %160 : vector<16x128xf32>
    %162 = vector.extract_strided_slice %161 {offsets = [0, 0], sizes = [8, 128], strides = [1, 1]} : vector<16x128xf32> to vector<8x128xf32>
    %163 = vector.extract_strided_slice %161 {offsets = [8, 0], sizes = [8, 128], strides = [1, 1]} : vector<16x128xf32> to vector<8x128xf32>
    %cst_64 = arith.constant 5.000000e-01 : f32
    %164 = vector.broadcast %cst_64 : f32 to vector<8x128xf32>
    %165 = arith.mulf %164, %162 : vector<8x128xf32>
    %166 = math.tanh %165 : vector<8x128xf32>
    %cst_65 = arith.constant 5.000000e-01 : f32
    %167 = vector.broadcast %cst_65 : f32 to vector<8x128xf32>
    %168 = arith.mulf %167, %166 : vector<8x128xf32>
    %cst_66 = arith.constant 5.000000e-01 : f32
    %169 = vector.broadcast %cst_66 : f32 to vector<8x128xf32>
    %170 = arith.addf %168, %169 : vector<8x128xf32>
    %171 = math.tanh %163 : vector<8x128xf32>
    %172 = arith.mulf %170, %171 : vector<8x128xf32>
    %c2_67 = arith.constant 2 : index
    %c0_68 = arith.constant 0 : index
    %c0_69 = arith.constant 0 : index
    %173 = vector.load %arg6[%c2_67, %c0_68, %c0_69] : memref<4x16x8xf32, #tpu.memory_space<vmem>>, vector<1x16x8xf32>
    %174 = vector.shape_cast %173 : vector<1x16x8xf32> to vector<16x8xf32>
    %cst_70 = arith.constant dense<0.000000e+00> : vector<16x128xf32>
    %175 = tpu.matmul %174, %172, %cst_70 {dimension_numbers = #tpu.dot_dimension_numbers<[1], [0], [0], [1], [0, 0, 1, 1], [], []>} : vector<16x8xf32>, vector<8x128xf32>, vector<16x128xf32> -> vector<16x128xf32>
    %176 = vector.extract_strided_slice %175 {offsets = [0, 0], sizes = [8, 128], strides = [1, 1]} : vector<16x128xf32> to vector<8x128xf32>
    %177 = arith.addf %172, %176 : vector<8x128xf32>
    %178 = vector.broadcast %143 : vector<8x1xf32> to vector<8x128xf32>
    %179 = arith.addf %177, %178 : vector<8x128xf32>
    %cst_71 = arith.constant 0.707106769 : f32
    %180 = vector.broadcast %cst_71 : f32 to vector<8x128xf32>
    %181 = arith.mulf %179, %180 : vector<8x128xf32>
    %182 = vector.extract_strided_slice %175 {offsets = [8, 0], sizes = [8, 128], strides = [1, 1]} : vector<16x128xf32> to vector<8x128xf32>
    %183 = arith.addf %139, %182 : vector<8x128xf32>
    %c3 = arith.constant 3 : index
    %c0_72 = arith.constant 0 : index
    %c0_73 = arith.constant 0 : index
    %184 = vector.load %arg5[%c3, %c0_72, %c0_73] : memref<4x24x1xf32, #tpu.memory_space<vmem>>, vector<1x24x1xf32>
    %185 = vector.shape_cast %184 : vector<1x24x1xf32> to vector<24x1xf32>
    %186 = vector.extract_strided_slice %185 {offsets = [0, 0], sizes = [16, 1], strides = [1, 1]} : vector<24x1xf32> to vector<16x1xf32>
    %187 = vector.extract_strided_slice %11 {offsets = [48, 0], sizes = [16, 128], strides = [1, 1]} : vector<64x128xf32> to vector<16x128xf32>
    %188 = vector.broadcast %186 : vector<16x1xf32> to vector<16x128xf32>
    %189 = arith.addf %187, %188 : vector<16x128xf32>
    %c3_74 = arith.constant 3 : index
    %c0_75 = arith.constant 0 : index
    %c0_76 = arith.constant 0 : index
    %190 = vector.load %arg3[%c3_74, %c0_75, %c0_76] : memref<4x16x24xf32, #tpu.memory_space<vmem>>, vector<1x16x24xf32>
    %191 = vector.shape_cast %190 : vector<1x16x24xf32> to vector<16x24xf32>
    %c2_i32_77 = arith.constant 2 : i32
    %192 = tpu.dynamic_rotate %181 by %c2_i32_77 dim 1 : vector<8x128xf32>, i32 -> vector<8x128xf32>
    %cst_78 = arith.constant 0.000000e+00 : f32
    %193 = vector.shape_cast %23 : vector<1x128xi1> to vector<1x128xi1>
    %194 = vector.broadcast %193 : vector<1x128xi1> to vector<8x128xi1>
    %195 = vector.broadcast %cst_78 : f32 to vector<8x128xf32>
    %196 = arith.select %194, %192, %195 : vector<8x128xi1>, vector<8x128xf32>
    %c126_i32_79 = arith.constant 126 : i32
    %197 = tpu.dynamic_rotate %181 by %c126_i32_79 dim 1 : vector<8x128xf32>, i32 -> vector<8x128xf32>
    %cst_80 = arith.constant 0.000000e+00 : f32
    %198 = vector.shape_cast %50 : vector<1x128xi1> to vector<1x128xi1>
    %199 = vector.broadcast %198 : vector<1x128xi1> to vector<8x128xi1>
    %200 = vector.broadcast %cst_80 : f32 to vector<8x128xf32>
    %201 = arith.select %199, %197, %200 : vector<8x128xi1>, vector<8x128xf32>
    %202 = tpu.concatenate %196, %181, %201 in 0 : vector<8x128xf32>, vector<8x128xf32>, vector<8x128xf32> -> vector<24x128xf32>
    %cst_81 = arith.constant dense<0.000000e+00> : vector<16x128xf32>
    %203 = tpu.matmul %191, %202, %cst_81 {dimension_numbers = #tpu.dot_dimension_numbers<[1], [0], [0], [1], [0, 0, 1, 1], [], []>} : vector<16x24xf32>, vector<24x128xf32>, vector<16x128xf32> -> vector<16x128xf32>
    %204 = arith.addf %189, %203 : vector<16x128xf32>
    %205 = vector.extract_strided_slice %204 {offsets = [0, 0], sizes = [8, 128], strides = [1, 1]} : vector<16x128xf32> to vector<8x128xf32>
    %206 = vector.extract_strided_slice %204 {offsets = [8, 0], sizes = [8, 128], strides = [1, 1]} : vector<16x128xf32> to vector<8x128xf32>
    %cst_82 = arith.constant 5.000000e-01 : f32
    %207 = vector.broadcast %cst_82 : f32 to vector<8x128xf32>
    %208 = arith.mulf %207, %205 : vector<8x128xf32>
    %209 = math.tanh %208 : vector<8x128xf32>
    %cst_83 = arith.constant 5.000000e-01 : f32
    %210 = vector.broadcast %cst_83 : f32 to vector<8x128xf32>
    %211 = arith.mulf %210, %209 : vector<8x128xf32>
    %cst_84 = arith.constant 5.000000e-01 : f32
    %212 = vector.broadcast %cst_84 : f32 to vector<8x128xf32>
    %213 = arith.addf %211, %212 : vector<8x128xf32>
    %214 = math.tanh %206 : vector<8x128xf32>
    %215 = arith.mulf %213, %214 : vector<8x128xf32>
    %c3_85 = arith.constant 3 : index
    %c0_86 = arith.constant 0 : index
    %c0_87 = arith.constant 0 : index
    %216 = vector.load %arg6[%c3_85, %c0_86, %c0_87] : memref<4x16x8xf32, #tpu.memory_space<vmem>>, vector<1x16x8xf32>
    %217 = vector.shape_cast %216 : vector<1x16x8xf32> to vector<16x8xf32>
    %218 = vector.extract_strided_slice %217 {offsets = [8, 0], sizes = [8, 8], strides = [1, 1]} : vector<16x8xf32> to vector<8x8xf32>
    %cst_88 = arith.constant dense<0.000000e+00> : vector<8x128xf32>
    %219 = tpu.matmul %218, %215, %cst_88 {dimension_numbers = #tpu.dot_dimension_numbers<[1], [0], [0], [1], [0, 0, 1, 1], [], []>} : vector<8x8xf32>, vector<8x128xf32>, vector<8x128xf32> -> vector<8x128xf32>
    %220 = arith.addf %183, %219 : vector<8x128xf32>
    %c0_89 = arith.constant 0 : index
    %c0_90 = arith.constant 0 : index
    %221 = vector.load %arg9[%c0_89, %c0_90] : memref<25x1xf32, #tpu.memory_space<vmem>>, vector<25x1xf32>
    %222 = vector.extract_strided_slice %221 {offsets = [0, 0], sizes = [8, 1], strides = [1, 1]} : vector<25x1xf32> to vector<8x1xf32>
    %223 = vector.extract_strided_slice %221 {offsets = [8, 0], sizes = [8, 1], strides = [1, 1]} : vector<25x1xf32> to vector<8x1xf32>
    %224 = vector.extract_strided_slice %221 {offsets = [16, 0], sizes = [8, 1], strides = [1, 1]} : vector<25x1xf32> to vector<8x1xf32>
    %225 = vector.extract_strided_slice %221 {offsets = [24, 0], sizes = [1, 1], strides = [1, 1]} : vector<25x1xf32> to vector<1x1xf32>
    %226 = vector.broadcast %222 : vector<8x1xf32> to vector<8x128xf32>
    %227 = arith.addf %220, %226 : vector<8x128xf32>
    %cst_91 = arith.constant 0.000000e+00 : f32
    %228 = vector.broadcast %cst_91 : f32 to vector<8x128xf32>
    %229 = arith.maximumf %227, %228 : vector<8x128xf32>
    %c0_92 = arith.constant 0 : index
    %c0_93 = arith.constant 0 : index
    %230 = vector.load %arg7[%c0_92, %c0_93] : memref<8x8xf32, #tpu.memory_space<vmem>>, vector<8x8xf32>
    %cst_94 = arith.constant dense<0.000000e+00> : vector<8x128xf32>
    %231 = tpu.matmul %230, %229, %cst_94 {dimension_numbers = #tpu.dot_dimension_numbers<[1], [0], [0], [1], [0, 0, 1, 1], [], []>} : vector<8x8xf32>, vector<8x128xf32>, vector<8x128xf32> -> vector<8x128xf32>
    %232 = vector.broadcast %223 : vector<8x1xf32> to vector<8x128xf32>
    %233 = arith.addf %231, %232 : vector<8x128xf32>
    %cst_95 = arith.constant 0.000000e+00 : f32
    %234 = vector.broadcast %cst_95 : f32 to vector<8x128xf32>
    %235 = arith.maximumf %233, %234 : vector<8x128xf32>
    %236 = vector.broadcast %224 : vector<8x1xf32> to vector<8x128xf32>
    %237 = arith.mulf %236, %235 : vector<8x128xf32>
    %cst_96 = arith.constant dense<0.000000e+00> : vector<128xf32>
    %238 = vector.multi_reduction <add>, %237, %cst_96 [0] : vector<8x128xf32> to vector<128xf32>
    %239 = vector.shape_cast %238 : vector<128xf32> to vector<1x128xf32>
    %240 = vector.broadcast %225 : vector<1x1xf32> to vector<1x128xf32>
    %241 = arith.addf %239, %240 : vector<1x128xf32>
    %242 = math.tanh %241 : vector<1x128xf32>
    %c0_97 = arith.constant 0 : index
    %c0_98 = arith.constant 0 : index
    %243 = vector.load %arg10[%c0_97, %c0_98] : memref<1x128xf32, #tpu.memory_space<vmem>>, vector<1x128xf32>
    tpu.vector_store %arg10[%c0_97, %c0_98], %242 {strides = array<i32>} : memref<1x128xf32, #tpu.memory_space<vmem>>, vector<1x128xf32>,
    return
  }
  func.func @transform_0(%arg0: i32) -> (i32, i32) {
    %c0_i32 = arith.constant 0 : i32
    %c0_i32_0 = arith.constant 0 : i32
    return %c0_i32, %arg0 : i32, i32
  }
  func.func @transform_1(%arg0: i32) -> (i32, i32) {
    %c0_i32 = arith.constant 0 : i32
    %c0_i32_0 = arith.constant 0 : i32
    return %c0_i32, %arg0 : i32, i32
  }
  func.func @transform_2(%arg0: i32) -> (i32, i32, i32) {
    %c0_i32 = arith.constant 0 : i32
    %c0_i32_0 = arith.constant 0 : i32
    %c0_i32_1 = arith.constant 0 : i32
    %c0_i32_2 = arith.constant 0 : i32
    return %c0_i32, %c0_i32_0, %c0_i32_1 : i32, i32, i32
  }
  func.func @transform_3(%arg0: i32) -> (i32, i32) {
    %c0_i32 = arith.constant 0 : i32
    %c0_i32_0 = arith.constant 0 : i32
    %c0_i32_1 = arith.constant 0 : i32
    return %c0_i32, %c0_i32_0 : i32, i32
  }
  func.func @transform_4(%arg0: i32) -> (i32, i32, i32) {
    %c0_i32 = arith.constant 0 : i32
    %c0_i32_0 = arith.constant 0 : i32
    %c0_i32_1 = arith.constant 0 : i32
    %c0_i32_2 = arith.constant 0 : i32
    return %c0_i32, %c0_i32_0, %c0_i32_1 : i32, i32, i32
  }
  func.func @transform_5(%arg0: i32) -> (i32, i32, i32) {
    %c0_i32 = arith.constant 0 : i32
    %c0_i32_0 = arith.constant 0 : i32
    %c0_i32_1 = arith.constant 0 : i32
    %c0_i32_2 = arith.constant 0 : i32
    return %c0_i32, %c0_i32_0, %c0_i32_1 : i32, i32, i32
  }
  func.func @transform_6(%arg0: i32) -> (i32, i32) {
    %c0_i32 = arith.constant 0 : i32
    %c0_i32_0 = arith.constant 0 : i32
    %c0_i32_1 = arith.constant 0 : i32
    return %c0_i32, %c0_i32_0 : i32, i32
  }
  func.func @transform_7(%arg0: i32) -> (i32, i32) {
    %c0_i32 = arith.constant 0 : i32
    %c0_i32_0 = arith.constant 0 : i32
    %c0_i32_1 = arith.constant 0 : i32
    return %c0_i32, %c0_i32_0 : i32, i32
  }
  func.func @transform_8(%arg0: i32) -> (i32, i32) {
    %c0_i32 = arith.constant 0 : i32
    %c0_i32_0 = arith.constant 0 : i32
    %c0_i32_1 = arith.constant 0 : i32
    return %c0_i32, %c0_i32_0 : i32, i32
  }
  func.func @transform_9(%arg0: i32) -> (i32, i32) {
    %c0_i32 = arith.constant 0 : i32
    %c0_i32_0 = arith.constant 0 : i32
    return %c0_i32, %arg0 : i32, i32
  }
}

</mosaic_0001>

<bundles_post_ra>
// kernel: wavenet_pallas.1
= control target key start
LH: loop header
LB: loop body
LE: loop exit
PB: predicated region body
PF: predicated region fallthrough
CT: control target
= control target key end

     0   :  { %14 = vsyncpa [#allocation3], 0  ;;  %s2265_s0 = inlined_call_operand.vmem [shape: f32[1,256], index: 0, kind: input, shape index: {}]   ;;  %s2266_s1 = inlined_call_operand.vmem [shape: f32[4,256], index: 1, kind: input, shape index: {}]   ;;  %s2267_s2 = inlined_call_operand.vmem [shape: f32[4,16,24], index: 2, kind: input, shape index: {}]   ;;  %s2268_s3 = inlined_call_operand.vmem [shape: f32[64,4], index: 3, kind: input, shape index: {}]   ;;  %s2269_s4 = inlined_call_operand.vmem [shape: f32[4,24,1], index: 4, kind: input, shape index: {}]   ;;  %s2270_s5 = inlined_call_operand.vmem [shape: f32[4,16,8], index: 5, kind: input, shape index: {}]   ;;  %s2271_s6 = inlined_call_operand.vmem [shape: f32[8,8], index: 6, kind: input, shape index: {}]   ;;  %s2272_s7 = inlined_call_operand.vmem [shape: f32[16,1], index: 7, kind: input, shape index: {}]   ;;  %s2273_s8 = inlined_call_operand.vmem [shape: f32[25,1], index: 8, kind: input, shape index: {}]   ;;  %s2274_s9 = inlined_call_operand.hbm [shape: f32[1,256], index: 9, kind: output, shape index: {}]  }
   0x1   :  { %16 = vsyncpa [#allocation3 + $0x1], 0  ;;  %s1939_s30 = smov 0   ;;  %s1941_s10 = smov 0  }
   0x2   :  { %s1943_s11 = smov 0   ;;  %s1945_s12 = smov 0  }
   0x3 LB: > { %s1960_s13 = sadd.s32 4294967295, %s1878_s12   ;;  %s1529_s14 = sadd.s32 4294967294, %s1878_s12   ;;  %s1878_s12 = sphi %s1945_s12, %s2284_s12   ;;  %s1874_s11 = sphi %s1943_s11, %s2283_s11   ;;  %s1870_s10 = sphi %s1941_s10, %s2282_s10   ;;  %s1866_s30 = sphi %s1939_s30, %s2281_s30  }
   0x4   : > { %s1964_s15 = sadd.s32 1, %s1878_s12   ;;  %s228_s16 = sadd.s32 1, %s1874_s11 }
   0x5   : > { %s225_s17 = ssub.s32 %s1878_s12, %s1964_s15  ;;  %p238_p0 = scmp.ne.s32.totalorder %s1874_s11, %s1870_s10 }
   0x6   : > { %p226_p1 = scmp.eq.s32.totalorder %s225_s17, 0  ;;  %p239_p2 = scmp.eq.s32.totalorder %s1960_s13, 1 }
   0x7   : > { %p244_p3 = scmp.ne.s32.totalorder %s1870_s10, %s1866_s30  ;;  %p245_p4 = scmp.eq.s32.totalorder %s1529_s14, 1 }
   0x8   : > { %s1975_s18 = scalar_select %p226_p1, %s1874_s11, %s228_s16  }
   0x9   : > { %p1977_p5 = por %p239_p2, %p238_p0  ;;  %p1981_p6 = por %p245_p4, %p244_p3 }
   0xa   : > { %p1532_p7 = scmp.ge.s32.totalorder %s1878_s12, 1  ;;  %p297_p8 = scmp.lt.s32.totalorder %s1878_s12, 3 }
   0xc   : > { %p298_p9 = pnand %p1532_p7, %p297_p8 }
   0xd   : > { %v343_v0 = vld [vmem:[%s2272_s7] sm:$0xff] (!%p298_p9)  ;;  %v1880_v1 = vmov (!%p298_p9), 0   ;;  %v344_v2 = vld [vmem:[%s2272_s7 + $0x8] sm:$0xff] (!%p298_p9)  ;;  %p334_p10 = scmp.lt.s32.totalorder (!%p298_p9), %s1960_s13, 1  ;;  %v526_v4 = vld [vmem:[%s2269_s4 + $0x10] sm:$0xff] (!%p298_p9)  ;;  %vm396_vm0 = vcmask (!%p298_p9), 1043456   ;;  %v505_v17 = vlaneseq (!%p298_p9) }
   0xe   : > { %301 = sbr.rel (%p298_p9) target bundleno = 2717 (0xa9d), region = 56  ;;  %1796 = vset.pattern.permute.xlu0 (!%p298_p9), %v1880_v1  ;;  %1797 = vset.pattern.permute.xlu1 (!%p298_p9), %v1880_v1  ;;  %v524_v3 = vld [vmem:[%s2269_s4] sm:$0xff] (!%p298_p9)  ;;  %vm371_vm1 = vcmask (!%p298_p9), 31744   ;;  %v364_v7 = vld [vmem:[%s2268_s3 + $0x8] sm:$0xff] (!%p298_p9)  ;;  %v365_v8 = vld [vmem:[%s2268_s3 + $0x10] sm:$0xff] (!%p298_p9)  ;;  %vm551_vm2 = vcmask (!%p298_p9), 195584  }
   0xf   : > { %347 = vperm.xlu0 (!%p298_p9), %1796, %v343_v0   ;;  %v363_v5 = vld [vmem:[%s2268_s3] sm:$0xff] (!%p298_p9)  ;;  %v366_v9 = vld [vmem:[%s2268_s3 + $0x18] sm:$0xff] (!%p298_p9)  ;;  %s1882_s24 = smov (!%p298_p9), 127   ;;  %v525_v16 = vld [vmem:[%s2269_s4 + $0x8] sm:$0xff] (!%p298_p9)  ;;  %v2032_v18 = vand.u32 (!%p298_p9), 127, %v505_v17  ;;  %vm1883_vm4 = vmmov (!%p298_p9), 1  }
  0x10   : > { %1634 = vmatprep.mubr.msk.f32.mxu0 (!%p298_p9), %vm371_vm1, %v363_v5  ;;  %v539_v12 = vld [vmem:[%s2267_s2] sm:$0xff] (!%p298_p9)  ;;  %v540_v25 = vld [vmem:[%s2267_s2 + $0x8] sm:$0xff] (!%p298_p9)  ;;  %v369_v28 = vld [vmem:[%s2268_s3 + $0x30] sm:$0xff] (!%p298_p9)  ;;  %vm643_vm7 = vcmask (!%p298_p9), 64512   ;;  %s1884_s22 = smov (!%p298_p9), 126   ;;  %vm1887_vm11 = vmmov (!%p298_p9), 0  }
  0x11   : > { %v512_v19 = vadd.s32 (!%p298_p9), 4294967295, %v2032_v18  ;;  %v2036_v20 = vadd.s32 (!%p298_p9), 1, %v2032_v18  ;;  %v367_v26 = vld [vmem:[%s2268_s3 + $0x20] sm:$0xff] (!%p298_p9)  ;;  %v368_v27 = vld [vmem:[%s2268_s3 + $0x28] sm:$0xff] (!%p298_p9)  ;;  %v370_v29 = vld [vmem:[%s2268_s3 + $0x38] sm:$0xff] (!%p298_p9)  ;;  %v508_v58 = vadd.s32 (!%p298_p9), 4294967294, %v2032_v18 }
  0x12   : > { %1640 = vmatprep.mubr.msk.f32.mxu1 (!%p298_p9), %vm371_vm1, %v367_v26  ;;  %v641_v30 = vld [vmem:[%s2270_s5] sm:$0xff] (!%p298_p9)  ;;  %v642_v43 = vld [vmem:[%s2270_s5 + $0x8] sm:$0xff] (!%p298_p9)  ;;  %v1553_v50 = vld [vmem:[%s2267_s2 + $0x10] sm:$0xff] (!%p298_p9)  ;;  %v2105_v59 = vadd.s32 (!%p298_p9), 2, %v2032_v18  ;;  %s332_s17 = sand.u32 (!%p298_p9), 1, %s1870_s10   ;;  %s1587_s21 = sshll.u32 (!%p298_p9), %s1960_s13, 4 }
  0x13   : > { %359 = vperm.xlu0 (!%p298_p9), %1796, %v344_v2   ;;  %vm513_vm3 = vcmp.ge.s32.totalorder (!%p298_p9), %v512_v19, 0  ;;  %vm518_vm6 = vcmp.lt.s32.totalorder (!%p298_p9), %v2036_v20, 128  ;;  %v1551_v55 = vld [vmem:[%s2269_s4 + $0x20] sm:$0xff] (!%p298_p9)  ;;  %v1550_v56 = vld [vmem:[%s2269_s4 + $0x18] sm:$0xff] (!%p298_p9)  ;;  %v1552_v57 = vld [vmem:[%s2269_s4 + $0x28] sm:$0xff] (!%p298_p9)  ;;  %vm509_vm8 = vcmp.ge.s32.totalorder (!%p298_p9), %v508_v58, 0  ;;  %s2223_s27 = scalar_lea.hbm (!%p298_p9), %s2274_s9, %s1587_s21 }
  0x14   : > { %vm2039_vm5 = vmpackc.low (!%p298_p9), %vm1883_vm4, %vm513_vm3  ;;  %vm522_vm10 = vcmp.lt.s32.totalorder (!%p298_p9), %v2105_v59, 128  ;;  %v1554_v0 = vld [vmem:[%s2267_s2 + $0x18] sm:$0xff] (!%p298_p9)  ;;  %v1559_v1 = vld [vmem:[%s2270_s5 + $0x10] sm:$0xff] (!%p298_p9)  ;;  %s1453_s28 = scalar_lea.sflag (!%p298_p9), [#allocation3], %s332_s17 }
  0x15   : > { %s335_s29 = scalar_select %p334_p10, %s1960_s13, 1  ;;  %vm2108_vm9 = vmpackc.low %vm1883_vm4, %vm509_vm8  ;;  %v1566_v18 = vld [vmem:[%s2267_s2 + $0x20] sm:$0xff]  ;;  %v1563_v26 = vld [vmem:[%s2269_s4 + $0x30] sm:$0xff] }
  0x16   : > { %v1342_v58 = vld [vmem:[%s2273_s8 + $0x8] sm:$0xff]  ;;  %s1888_s13 = smov [#allocation2]  }
  0x17   : > { %529 = vperm.xlu0 %1796, %v524_v3   ;;  %s1533_s14 = sshll.u32 %s335_s29, 2 }
  0x18   : > { %s340_s23 = scalar_lea.vmem %s2266_s1, %s1533_s14  ;;  %s336_s14 = scalar_lea.vmem %s2265_s0, %s335_s29 }
  0x19   : > { %v342_v6 = vld [vmem:[%s340_s23] sm:$0xf]  ;;  %s1881_s29 = smov 1   ;;  %s1885_s23 = smov 2  }
  0x1a   : > { %1632 = vmatprep.subr.msk.mxu0 %vm396_vm0, %v342_v6  ;;  %1731 = vmatprep.subr.msk.mxu1 %vm396_vm0, %v342_v6  ;;  %v1534_v11 = vld [vmem:[%s336_s14] ss:$0 sm:$0xff] }
  0x1b   : > { %728 = vperm.xlu0 %1796, %v526_v4   ;;  %1633 = vmatpush3.msk.msra.mxu0 %vm396_vm0, %v342_v6 }
  0x1c   : > { %1732 = vmatpush3.msk.msra.mxu1 %vm396_vm0, %v342_v6  ;;  %1635 = vmatmul.mubr.msk.f32.vlgmr.msra.gmra.mrb[0].mxu0 %vm371_vm1, %v364_v7 }
  0x1d   : > { %1637 = vmatprep.mubr.msk.f32.mxu0 %vm371_vm1, %v365_v8  ;;  %1641 = vmatmul.mubr.msk.f32.vlgmr.msra.gmra.mrb[0].mxu1 %vm371_vm1, %v368_v27  ;;  %v1565_v27 = vld [vmem:[%s2269_s4 + $0x40] sm:$0xff] }
  0x1e   : > { %1643 = vmatprep.mubr.msk.f32.mxu1 %vm371_vm1, %v369_v28 }
  0x20   : > { %1638 = vmatmul.mubr.msk.f32.gmra.mrb[2].mxu0 %vm371_vm1, %v366_v9 }
  0x21   : > { %1652 = vmatprep.mubr.msk.f32.mxu0 %vm551_vm2, %v539_v12  ;;  %1644 = vmatmul.mubr.msk.f32.gmra.mrb[2].mxu1 %vm371_vm1, %v370_v29 }
  0x22   : > { %1657 = vmatprep.mubr.msk.f32.mxu1 %vm643_vm7, %v641_v30 }
  0x8e   : > { %v348_v10 = vpop.permute.xlu0 %347 }
  0x8f   : > { %v356_v13 = vmul.f32 %v1534_v11, %v348_v10 }
  0x92   : > { %v360_v14 = vpop.permute.xlu0 %359 }
  0x93   : > { %v362_v15 = vadd.f32 %v360_v14, %v356_v13  ;;  %v1560_v14 = vld [vmem:[%s2270_s5 + $0x18] sm:$0xff] }
  0x95   : > { %541 = vrot.lane.b32.xlu1 %v362_v15, %s1881_s29 }
  0x96   : > { %v530_v32 = vpop.permute.xlu0 %529 }
  0x99   : > { %546 = vrot.lane.b32.xlu1 %v362_v15, %s1882_s24 }
  0x9a   : > { %v729_v52 = vpop.permute.xlu0 %728 }
  0x9d   : > { %534 = vperm.xlu1 %1797, %v525_v16  }
  0xf0   : > { %v2080_v44 = vpop.f32.mrb[0].mxu1 }
  0xf1   : > { %v2082_v45 = vpop.f32.mrb[1].mxu1 }
  0xf4   : > { %v2084_v46 = vpop.f32.mrb[2].mxu1 }
  0xf5   : > { %v2086_v47 = vpop.f32.mrb[3].mxu1 }
 0x107   : > { %v542_v21 = vpop.permute.xlu1 %541 }
 0x108   : > { %v1707_v23 = vpack.c.bf16 %v362_v15, %v542_v21 }
 0x10a   : > { %1709 = vmatprep.subr.msk.bf16.mxu0 %vm2039_vm5, %v1707_v23 }
 0x10b   : > { %1712 = vmatpush3.bf16.msk.msra.mxu0 %vm2039_vm5, %v1707_v23  ;;  %v547_v24 = vpop.permute.xlu1 %546 }
 0x10c   : > { %1650 = vmatprep.subr.msk.mxu0 %vm518_vm6, %v547_v24 }
 0x10f   : > { %1651 = vmatpush3.msk.msra.mxu0 %vm518_vm6, %v547_v24 }
 0x110   : > { %1653 = vmatmul.mubr.msk.f32.vlgmr.msra.gmra.mrb[0].mxu0 %vm551_vm2, %v540_v25  ;;  %v1564_v25 = vld [vmem:[%s2269_s4 + $0x38] sm:$0xff] }
 0x111   : > { %1666 = vmatprep.mubr.msk.f32.mxu0 %vm551_vm2, %v1553_v50 }
 0x11c   : > { %v535_v35 = vpop.permute.xlu1 %534 }
 0x1e3   : > { %v1654_v31 = vpop.f32.mrb[0].mxu0 }
 0x1e4   : > { %v624_v33 = vpop.f32.mrb[1].mxu0  ;;  %v1733_v37 = vadd.f32 %v1654_v31, %v535_v35  ;;  %v1567_v31 = vld [vmem:[%s2267_s2 + $0x28] sm:$0xff] }
 0x1e5   : > { %v1734_v34 = vadd.f32 %v624_v33, %v530_v32  ;;  %v1572_v32 = vld [vmem:[%s2270_s5 + $0x20] sm:$0xff] }
 0x1e7   : > { %v635_v36 = vmul.f32 0.5, %v1734_v34 }
 0x1e9   : > { %1798 = vtanh.f32 %v635_v36 }
 0x1ea   : > { %1800 = vtanh.f32 %v1733_v37 }
 0x1f3   : > { %v1799_v38 = vpop.eup %1798 }
 0x1f4   : > { %v637_v39 = vmul.f32 0.5, %v1799_v38  ;;  %v1801_v41 = vpop.eup %1800 }
 0x1f6   : > { %v638_v40 = vadd.f32 0.5, %v637_v39 }
 0x1f8   : > { %v640_v42 = vmul.f32 %v1801_v41, %v638_v40 }
 0x1fa   : > { %1655 = vmatprep.subr.mxu1 %v640_v42 }
 0x1fb   : > { %1656 = vmatpush3.msra.mxu1 %v640_v42 }
 0x1fc   : > { %1658 = vmatmul.mubr.msk.f32.vlgmr.msra.gmra.mrb[4].mxu1 %vm643_vm7, %v642_v43 }
 0x1fd   : > { %1671 = vmatprep.mubr.msk.f32.mxu1 %vm643_vm7, %v1559_v1 }
 0x2cf   : > { %v1659_v48 = vpop.f32.mrb[4].mxu1 }
 0x2d0   : > { %v716_v49 = vpop.f32.mrb[5].mxu1 }
 0x2d1   : > { %v725_v51 = vadd.f32 %v716_v49, %v640_v42  ;;  %v1573_v49 = vld [vmem:[%s2270_s5 + $0x28] sm:$0xff] }
 0x2d3   : > { %v731_v53 = vadd.f32 %v729_v52, %v725_v51  ;;  %v1578_v51 = vld [vmem:[%s2267_s2 + $0x30] sm:$0xff] }
 0x2d5   : > { %v732_v54 = vmul.f32 0.70710677, %v731_v53 }
 0x2d7   : > { %758 = vrot.lane.b32.xlu0 %v732_v54, %s1884_s22  ;;  %753 = vrot.lane.b32.xlu1 %v732_v54, %s1885_s23 }
 0x2db   : > { %745 = vperm.xlu0 %1796, %v1551_v55   ;;  %740 = vperm.xlu1 %1797, %v1550_v56   ;;  %v1577_v56 = vld [vmem:[%s2269_s4 + $0x50] sm:$0xff] }
 0x2df   : > { %939 = vperm.xlu1 %1797, %v1552_v57   ;;  %v1576_v57 = vld [vmem:[%s2269_s4 + $0x48] sm:$0xff] }
 0x349   : > { %v754_v60 = vpop.permute.xlu1 %753  ;;  %v759_v63 = vpop.permute.xlu0 %758 }
 0x34a   : > { %v1713_v62 = vpack.c.bf16 %v732_v54, %v754_v60  ;;  %v1341_v60 = vld [vmem:[%s2273_s8] sm:$0xff] }
 0x34c   : > { %1715 = vmatprep.subr.msk.bf16.mxu0 %vm2108_vm9, %v1713_v62 }
 0x34d   : > { %1718 = vmatpush3.bf16.msk.msra.mxu0 %vm2108_vm9, %v1713_v62  ;;  %v1344_v62 = vld [vmem:[%s2273_s8 + $0x18] sm:$0x1] }
 0x34e   : > { %1664 = vmatprep.subr.msk.mxu0 %vm522_vm10, %v759_v63 }
 0x351   : > { %1665 = vmatpush3.msk.msra.mxu0 %vm522_vm10, %v759_v63  ;;  %v1343_v63 = vld [vmem:[%s2273_s8 + $0x10] sm:$0xff] }
 0x352   : > { %1667 = vmatmul.mubr.msk.f32.vlgmr.msra.gmra.mrb[2].mxu0 %vm551_vm2, %v1554_v0 }
 0x353   : > { %1680 = vmatprep.mubr.msk.f32.mxu0 %vm551_vm2, %v1566_v18 }
 0x35a   : > { %v741_v3 = vpop.permute.xlu1 %740  ;;  %v746_v7 = vpop.permute.xlu0 %745 }
 0x35e   : > { %v940_v21 = vpop.permute.xlu1 %939 }
 0x425   : > { %v1668_v2 = vpop.f32.mrb[2].mxu0 }
 0x426   : > { %v835_v4 = vpop.f32.mrb[3].mxu0  ;;  %v1735_v8 = vadd.f32 %v1668_v2, %v746_v7 }
 0x427   : > { %v1736_v5 = vadd.f32 %v835_v4, %v741_v3  ;;  %v1579_v3 = vld [vmem:[%s2267_s2 + $0x38] sm:$0xff]  ;;  %v1886_v4 = vmov 0.0  }
 0x429   : > { %v846_v6 = vmul.f32 0.5, %v1736_v5 }
 0x42b   : > { %1802 = vtanh.f32 %v846_v6 }
 0x42c   : > { %1804 = vtanh.f32 %v1735_v8 }
 0x435   : > { %v1803_v9 = vpop.eup %1802 }
 0x436   : > { %v848_v10 = vmul.f32 0.5, %v1803_v9  ;;  %v1805_v12 = vpop.eup %1804 }
 0x438   : > { %v849_v11 = vadd.f32 0.5, %v848_v10 }
 0x43a   : > { %v851_v13 = vmul.f32 %v1805_v12, %v849_v11 }
 0x43c   : > { %1669 = vmatprep.subr.mxu1 %v851_v13 }
 0x43d   : > { %1670 = vmatpush3.msra.mxu1 %v851_v13 }
 0x43e   : > { %1672 = vmatmul.mubr.msk.f32.vlgmr.msra.gmra.mrb[6].mxu1 %vm643_vm7, %v1560_v14 }
 0x43f   : > { %1685 = vmatprep.mubr.msk.f32.mxu1 %vm643_vm7, %v1572_v32 }
 0x511   : > { %v1673_v15 = vpop.f32.mrb[6].mxu1 }
 0x512   : > { %v944_v16 = vadd.f32 %v1673_v15, %v1659_v48  ;;  %v927_v17 = vpop.f32.mrb[7].mxu1 }
 0x513   : > { %v936_v19 = vadd.f32 %v927_v17, %v851_v13  ;;  %v1584_v17 = vld [vmem:[%s2270_s5 + $0x38] sm:$0xff] }
 0x515   : > { %v942_v23 = vadd.f32 %v940_v21, %v936_v19 }
 0x517   : > { %v943_v24 = vmul.f32 0.70710677, %v942_v23 }
 0x519   : > { %967 = vrot.lane.b32.xlu1 %v943_v24, %s1882_s24  ;;  %964 = vrot.lane.b32.xlu0 %v943_v24, %s1881_s29  ;;  %s1820_s24 = sshll.u32 %s1888_s13, 4  ;;  %s1821_s24 = int_to_ptr.vmem [resolvable:$false] %s1820_s24 }
 0x51a   : > { %s1822_s16 = scalar_lea.vmem %s1821_s24, 32 }
 0x51d   : > { %956 = vperm.xlu1 %1797, %v1564_v25   ;;  %951 = vperm.xlu0 %1796, %v1563_v26  }
 0x521   : > { %1146 = vperm.xlu0 %1796, %v1565_v27  }
 0x58b   : > { %v965_v28 = vpop.permute.xlu0 %964  ;;  %v968_v30 = vpop.permute.xlu1 %967 }
 0x58c   : > { %v1719_v29 = vpack.c.bf16 %v943_v24, %v965_v28  ;;  %v1352_v24 = vld [vmem:[%s2271_s6] sm:$0xff] }
 0x58e   : > { %1721 = vmatprep.subr.msk.bf16.mxu0 %vm2039_vm5, %v1719_v29 }
 0x58f   : > { %1724 = vmatpush3.bf16.msk.msra.mxu0 %vm2039_vm5, %v1719_v29 }
 0x590   : > { %1678 = vmatprep.subr.msk.mxu0 %vm518_vm6, %v968_v30 }
 0x593   : > { %1679 = vmatpush3.msk.msra.mxu0 %vm518_vm6, %v968_v30 }
 0x594   : > { %1681 = vmatmul.mubr.msk.f32.vlgmr.msra.gmra.mrb[4].mxu0 %vm551_vm2, %v1567_v31 }
 0x595   : > { %1694 = vmatprep.mubr.msk.f32.mxu0 %vm551_vm2, %v1578_v51 }
 0x59c   : > { %v957_v22 = vpop.permute.xlu1 %956  ;;  %v952_v33 = vpop.permute.xlu0 %951 }
 0x59d   : > { %v960_v34 = vadd.f32 %v2080_v44, %v957_v22  ;;  %v959_v35 = vadd.f32 %v952_v33, %v2082_v45 }
 0x5a0   : > { %v1147_v53 = vpop.permute.xlu0 %1146 }
 0x667   : > { %v1682_v36 = vpop.f32.mrb[4].mxu0 }
 0x668   : > { %v1052_v37 = vadd.f32 %v1682_v36, %v960_v34  ;;  %v1042_v38 = vpop.f32.mrb[5].mxu0 }
 0x669   : > { %v1051_v39 = vadd.f32 %v1042_v38, %v959_v35 }
 0x66b   : > { %v1053_v20 = vmul.f32 0.5, %v1051_v39 }
 0x66d   : > { %1806 = vtanh.f32 %v1053_v20 }
 0x66e   : > { %1808 = vtanh.f32 %v1052_v37 }
 0x677   : > { %v1807_v40 = vpop.eup %1806 }
 0x678   : > { %v1055_v41 = vmul.f32 0.5, %v1807_v40  ;;  %v1809_v43 = vpop.eup %1808 }
 0x67a   : > { %v1056_v42 = vadd.f32 0.5, %v1055_v41 }
 0x67c   : > { %v1058_v48 = vmul.f32 %v1809_v43, %v1056_v42 }
 0x67e   : > { %1683 = vmatprep.subr.mxu1 %v1058_v48 }
 0x67f   : > { %1684 = vmatpush3.msra.mxu1 %v1058_v48 }
 0x680   : > { %1686 = vmatmul.mubr.msk.f32.vlgmr.msra.gmra.mrb[8].mxu1 %vm643_vm7, %v1573_v49  ;;  %1697 = vmatprep.subr.mxu1 %v1886_v4 }
 0x681   : > { %1699 = vmatprep.mubr.msk.f32.mxu1 %vm1887_vm11, %v1886_v4 }
 0x753   : > { %v1687_v44 = vpop.f32.mrb[8].mxu1 }
 0x754   : > { %v1151_v45 = vadd.f32 %v1687_v44, %v944_v16  ;;  %v1134_v50 = vpop.f32.mrb[9].mxu1 }
 0x755   : > { %v1143_v52 = vadd.f32 %v1134_v50, %v1058_v48 }
 0x757   : > { %v1149_v54 = vadd.f32 %v1147_v53, %v1143_v52 }
 0x759   : > { %v1150_v55 = vmul.f32 0.70710677, %v1149_v54 }
 0x75b   : > { %1173 = vrot.lane.b32.xlu0 %v1150_v55, %s1884_s22  ;;  %1170 = vrot.lane.b32.xlu1 %v1150_v55, %s1885_s23  ;;  %s333_s22 = scalar_lea.vmem [#allocation2], %s332_s17 }
 0x75c   : > { %s1465_s23 = sshll.u32 %s333_s22, 4  ;;  %s2225_s23 = int_to_ptr.vmem [resolvable:$true] %s1465_s23 }
 0x75d   : > { %s1816_s29 = scalar_lea.vmem %s2225_s23, 16  ;;  %p1823_p0 = scmp.lt.s32.totalorder %s2225_s23, %s1821_s24 }
 0x75e   : > { %p1817_p11 = scmp.ne.s32.totalorder %s2225_s23, %s1816_s29  ;;  %p1824_p1 = scmp.lt.s32.totalorder %s1822_s16, %s1816_s29 }
 0x75f   : > { %1162 = vperm.xlu0 %1796, %v1577_v56   ;;  %1157 = vperm.xlu1 %1797, %v1576_v57  }
 0x760   : > { %p1818_p12 = pnand %p1817_p11, %p1977_p5  ;;  %p1825_p2 = por %p1824_p1, %p1823_p0 }
 0x762   : > { %p1819_p13 = pneg %p1818_p12 }
 0x763   : > { %1355 = vperm.xlu0 %1796, %v1342_v58   ;;  %1347 = vperm.xlu1 %1797, %v1341_v60  }
 0x764   : > { %p1826_p3 = pnand %p1825_p2, %p1819_p13 }
 0x767   : > { %1446 = vperm.xlu0 %1796, %v1344_v62   ;;  %1434 = vperm.xlu1 %1797, %v1343_v63  }
 0x7cd   : > { %v1171_v0 = vpop.permute.xlu1 %1170  ;;  %v1174_v2 = vpop.permute.xlu0 %1173 }
 0x7ce   : > { %v1725_v1 = vpack.c.bf16 %v1150_v55, %v1171_v0 }
 0x7d0   : > { %1727 = vmatprep.subr.msk.bf16.mxu0 %vm2108_vm9, %v1725_v1 }
 0x7d1   : > { %1730 = vmatpush3.bf16.msk.msra.mxu0 %vm2108_vm9, %v1725_v1 }
 0x7d2   : > { %1692 = vmatprep.subr.msk.mxu0 %vm522_vm10, %v1174_v2 }
 0x7d5   : > { %1693 = vmatpush3.msk.msra.mxu0 %vm522_vm10, %v1174_v2 }
 0x7d6   : > { %1695 = vmatmul.mubr.msk.f32.vlgmr.msra.gmra.mrb[6].mxu0 %vm551_vm2, %v1579_v3 }
 0x7de   : > { %v1163_v5 = vpop.permute.xlu0 %1162  ;;  %v1158_v61 = vpop.permute.xlu1 %1157 }
 0x7df   : > { %v1166_v6 = vadd.f32 %v2084_v46, %v1163_v5  ;;  %v1165_v7 = vadd.f32 %v1158_v61, %v2086_v47 }
 0x7e2   : > { %v1348_v19 = vpop.permute.xlu1 %1347  ;;  %v1356_v25 = vpop.permute.xlu0 %1355 }
 0x7e6   : > { %v1435_v30 = vpop.permute.xlu1 %1434  ;;  %v1447_v37 = vpop.permute.xlu0 %1446 }
 0x8a9   : > { %v1696_v8 = vpop.f32.mrb[6].mxu0 }
 0x8aa   : > { %v1258_v9 = vadd.f32 %v1696_v8, %v1166_v6  ;;  %v1248_v10 = vpop.f32.mrb[7].mxu0 }
 0x8ab   : > { %v1257_v11 = vadd.f32 %v1248_v10, %v1165_v7 }
 0x8ad   : > { %v1259_v12 = vmul.f32 0.5, %v1257_v11 }
 0x8af   : > { %1810 = vtanh.f32 %v1259_v12 }
 0x8b0   : > { %1812 = vtanh.f32 %v1258_v9 }
 0x8b9   : > { %v1811_v59 = vpop.eup %1810 }
 0x8ba   : > { %v1261_v13 = vmul.f32 0.5, %v1811_v59  ;;  %v1813_v15 = vpop.eup %1812 }
 0x8bc   : > { %v1262_v14 = vadd.f32 0.5, %v1261_v13 }
 0x8be   : > { %v1264_v16 = vmul.f32 %v1813_v15, %v1262_v14 }
 0x8c0   : > { %1698 = vmatpush3.msra.mxu1 %v1264_v16 }
 0x8c1   : > { %1700 = vmatmul.mubr.msk.f32.vlgmr.msra.gmra.mrb[10].mxu1 %vm643_vm7, %v1584_v17  ;;  %1702 = vmatprep.subr.mxu1 %v1886_v4 }
 0x8c2   : > { %1704 = vmatprep.mubr.msk.f32.mxu1 %vm1887_vm11, %v1886_v4 }
 0x994   : > { %v1336_v46 = vpop.f32.mrb[10].mxu1 }
 0x995   : > { %v1340_v47 = vadd.f32 %v1336_v46, %v1151_v45  ;;  %v1701_v18 = vpop.f32.mrb[11].mxu1 }
 0x997   : > { %v1350_v21 = vadd.f32 %v1348_v19, %v1340_v47 }
 0x999   : > { %v1351_v23 = vmax.f32 %v1350_v21, 0.0 }
 0x99b   : > { %1703 = vmatpush3.msra.mxu1 %v1351_v23 }
 0x99c   : > { %1705 = vmatmul.mubr.msk.f32.vlgmr.msra.gmra.mrb[12].mxu1 %vm643_vm7, %v1352_v24 }
 0xa6f   : > { %v1427_v26 = vpop.f32.mrb[12].mxu1 }
 0xa70   : > { %v1428_v27 = vadd.f32 %v1427_v26, %v1356_v25  ;;  %v1706_v28 = vpop.f32.mrb[13].mxu1 }
 0xa72   : > { %v1431_v29 = vmax.f32 %v1428_v27, 0.0 }
 0xa74   : > { %v1437_v31 = vmul.f32 %v1435_v30, %v1431_v29 }
 0xa76   : > { %v1438_v32 = vrot.slane %v1437_v31, 4 }
 0xa78   : > { %v1439_v22 = vadd.f32 %v1438_v32, %v1437_v31 }
 0xa7a   : > { %v1440_v33 = vrot.slane %v1439_v22, 2 }
 0xa7c   : > { %v1441_v34 = vadd.f32 %v1440_v33, %v1439_v22 }
 0xa7e   : > { %v1442_v35 = vrot.slane %v1441_v34, 1 }
 0xa80   : > { %v1443_v36 = vadd.f32 %v1442_v35, %v1441_v34 }
 0xa82   : > { %v1449_v38 = vadd.f32 %v1447_v37, %v1443_v36 }
 0xa84   : > { %1814 = vtanh.f32 %v1449_v38 }
 0xa8e   : > { %v1815_v39 = vpop.eup %1814 }
 0xa8f   : > { %1451 = vst [vmem:[%s333_s22] sm:$0x1] %v1815_v39 }
 0xa90   : > { %1829 = shalt.err (!%p1826_p3)
}
 0xa91   : > { %s1830_s14 = scalar_lea.hbm %s2223_s27, 16  ;;  %s1834_s22 = scalar_lea.hbm %s2274_s9, 32 }
 0xa92   : > { %p1831_p4 = scmp.ne.s32.totalorder %s2223_s27, %s1830_s14  ;;  %p1835_p9 = scmp.lt.u32.totalorder %s2223_s27, %s2274_s9 }
 0xa93   : > { %p1836_p10 = scmp.lt.u32.totalorder %s1834_s22, %s1830_s14  ;;  %p1838_p12 = scmp.lt.u32.totalorder %s1830_s14, %s2223_s27 }
 0xa94   : > { %p1832_p7 = pnand %p1831_p4, %p1977_p5 }
 0xa95   : > { %p1837_p11 = por %p1836_p10, %p1835_p9 }
 0xa96   : > { %p1833_p8 = pneg %p1832_p7 }
 0xa97   : > { %p1839_p13 = por %p1838_p12, %p1837_p11 }
 0xa99   : > { %p1840_p0 = pnand %p1839_p13, %p1833_p8 }
 0xa9b   : > { %1843 = shalt.err (!%p1840_p0)
}
 0xa9c   : > { %1749 = dma.vmem_to_hbm [thread:$0]  (%p1977_p5), %s2225_s23, 16, %s2223_s27, %s1453_s28  }
 0xa9d PF: > { %p1755_p1 = scmp.ge.s32.totalorder %s1878_s12, 2  ;;  %s1477_s29 = sand.u32 1, %s1866_s30  }
 0xa9e   : > { %s1478_s13 = scalar_lea.sflag [#allocation3], %s1477_s29 }
 0xa9f   : > { %p1752_p2 = pnand %p1755_p1, %p1981_p6 }
 0xaa1   : > { %1861 = dma.done.wait (!%p1752_p2), %s1478_s13, 16  }
 0xaa2   : > { %1863 = vsyncadd (!%p1752_p2), %s1478_s13, 4294967280  ;;  %p19_p3 = scmp.ge.s32.totalorder %s1964_s15, 4   ;;  %s2281_s30 = smov %s1870_s10 }
 0xaa3   : > { %s2282_s10 = smov %s1874_s11  ;;  %s2283_s11 = smov %s1975_s18 }
 0xaa4   : > { %s2284_s12 = smov %s1964_s15  ;;  %21 = sbr.rel (!%p19_p3) target bundleno = 3 (0x3), region = 103 }
 0xaab   :  { %1482 = vsyncpa [#allocation3], 1 }
 0xaac   :  { %1484 = vsyncpa [#allocation3 + $0x1], 1 }

</bundles_post_ra>
